<compile_context>
chip_gen: v6e
topology: v6e:2x2x1
jax: 0.10.0
libtpu: 0.0.40
codegen_flags: <defaults>
</compile_context>

<pallas_src>
import functools

import jax
import jax.numpy as jnp
from jax.experimental import pallas as pl
from jax.experimental.pallas import tpu as pltpu

IN_FEATURES = 784       # 1 * 28 * 28
HIDDEN = 100
HIDDEN_PAD = 128        # lane-dense hidden width
NUM_CLASSES = 10
CLASSES_PAD = 128       # lane-dense output width (sliced back to 10 in wrapper)


def _round_up(x, m):
    return (x + m - 1) // m * m


def _cdiv(a, b):
    return -(-a // b)


def _choose_tile(n, target):
    """Balanced batch tiles: ~target rows, multiple of 16, >=2 (even) grid steps when possible."""
    num_tiles = max(_cdiv(n, max(target, 16)), 1)
    if num_tiles == 1 and n > 16:
        num_tiles = 2                      # give both v7x TensorCores work
    if num_tiles > 2 and num_tiles % 2:
        num_tiles += 1                     # even step count shards evenly across 2 TCs
    tile_b = _round_up(_cdiv(n, num_tiles), 16)
    return tile_b, num_tiles


def mlp_logsoftmax_kernel(x_ref, w1_ref, b1_ref, w2_ref, b2_ref, w3_ref, b3_ref, o_ref):
    """One batch tile: 3 MXU matmuls (bf16 operands, f32 acc) + ReLU + row log-softmax."""
    # x arrives as f32 straight from HBM; cast to bf16 only for the MXU operand.
    x = x_ref[...].astype(jnp.bfloat16)                                   # (TILE_B, 784)

    h1 = jnp.dot(x, w1_ref[...], preferred_element_type=jnp.float32) + b1_ref[...]
    h1 = jnp.maximum(h1, 0.0)                                             # f32 ReLU

    h2 = jnp.dot(h1.astype(jnp.bfloat16), w2_ref[...],
                 preferred_element_type=jnp.float32) + b2_ref[...]
    h2 = jnp.maximum(h2, 0.0)

    logits = jnp.dot(h2.astype(jnp.bfloat16), w3_ref[...],
                     preferred_element_type=jnp.float32) + b3_ref[...]    # (TILE_B, 128)

    # Mask the 118 padded class columns so log-softmax over dim=1 is unchanged.
    col = jax.lax.broadcasted_iota(jnp.int32, logits.shape, 1)
    logits = jnp.where(col < NUM_CLASSES, logits, -1e30)

    # Numerically stable log-softmax along the feature axis (f32 throughout).
    m = jnp.max(logits, axis=-1, keepdims=True)
    shifted = logits - m
    lse = jnp.log(jnp.sum(jnp.exp(shifted), axis=-1, keepdims=True))
    o_ref[...] = (shifted - lse).astype(o_ref.dtype)                     # bf16 store


def _pad_and_cast_params(params):
    """Zero-pad feature dims to 128 and cast matmul weights to bf16 (biases stay f32)."""
    w1, b1, w2, b2, w3, b3 = params
    w1p = jnp.pad(w1, ((0, 0), (0, HIDDEN_PAD - HIDDEN))).astype(jnp.bfloat16)
    b1p = jnp.pad(b1, ((0, 0), (0, HIDDEN_PAD - HIDDEN))).astype(jnp.float32)
    w2p = jnp.pad(w2, ((0, HIDDEN_PAD - HIDDEN), (0, HIDDEN_PAD - HIDDEN))).astype(jnp.bfloat16)
    b2p = jnp.pad(b2, ((0, 0), (0, HIDDEN_PAD - HIDDEN))).astype(jnp.float32)
    w3p = jnp.pad(w3, ((0, HIDDEN_PAD - HIDDEN), (0, CLASSES_PAD - NUM_CLASSES))).astype(jnp.bfloat16)
    b3p = jnp.pad(b3, ((0, 0), (0, CLASSES_PAD - NUM_CLASSES))).astype(jnp.float32)
    return w1p, b1p, w2p, b2p, w3p, b3p


@functools.partial(jax.jit, static_argnames=("tile_b",))
def net_forward(x_nchw, params, *, tile_b=1024):
    """x_nchw: (N, 1, 28, 28) float32 -> (N, 10) float32 log-probabilities."""
    n = x_nchw.shape[0]
    x2d = x_nchw.reshape(n, -1)                       # nn.Flatten(): (N, 784), stays f32 (free view)

    tb, num_tiles = _choose_tile(n, int(tile_b))
    n_pad = tb * num_tiles
    if n_pad != n:
        x2d = jnp.pad(x2d, ((0, n_pad - n), (0, 0)))

    w1p, b1p, w2p, b2p, w3p, b3p = _pad_and_cast_params(params)

    cost = pl.CostEstimate(
        flops=2 * n_pad * (IN_FEATURES * HIDDEN_PAD + HIDDEN_PAD * HIDDEN_PAD
                           + HIDDEN_PAD * CLASSES_PAD),
        transcendentals=n_pad * (CLASSES_PAD + 1),
        bytes_accessed=(n_pad * IN_FEATURES * 4                            # f32 x stream
                        + (IN_FEATURES * HIDDEN_PAD
                           + HIDDEN_PAD * HIDDEN_PAD
                           + HIDDEN_PAD * CLASSES_PAD) * 2                 # bf16 weights
                        + 3 * CLASSES_PAD * 4                              # f32 biases
                        + n_pad * CLASSES_PAD * 2),                        # bf16 output
    )

    out_padded = pl.pallas_call(
        mlp_logsoftmax_kernel,
        out_shape=jax.ShapeDtypeStruct((n_pad, CLASSES_PAD), jnp.bfloat16),
        grid=(num_tiles,),
        in_specs=[
            pl.BlockSpec((tb, IN_FEATURES), lambda i: (i, 0)),              # streamed f32 x
            pl.BlockSpec((IN_FEATURES, HIDDEN_PAD), lambda i: (0, 0)),      # resident weights
            pl.BlockSpec((1, HIDDEN_PAD), lambda i: (0, 0)),
            pl.BlockSpec((HIDDEN_PAD, HIDDEN_PAD), lambda i: (0, 0)),
            pl.BlockSpec((1, HIDDEN_PAD), lambda i: (0, 0)),
            pl.BlockSpec((HIDDEN_PAD, CLASSES_PAD), lambda i: (0, 0)),
            pl.BlockSpec((1, CLASSES_PAD), lambda i: (0, 0)),
        ],
        out_specs=pl.BlockSpec((tb, CLASSES_PAD), lambda i: (i, 0)),        # lane-dense bf16 store
        compiler_params=pltpu.CompilerParams(
            dimension_semantics=("parallel",),                              # megacore on v7x
            vmem_limit_bytes=32 * 1024 * 1024),                             # headroom on v5e
        cost_estimate=cost,
    )(x2d, w1p, b1p, w2p, b2p, w3p, b3p)

    return out_padded[:n, :NUM_CLASSES].astype(jnp.float32)


def init_params(key):
    """Deterministic synthetic init with the same shapes as the PyTorch module."""
    k1, k2, k3, k4, k5, k6 = jax.random.split(key, 6)
    w1 = jax.random.uniform(k1, (784, 100), jnp.float32, -1.0, 1.0) / jnp.sqrt(784.0)
    b1 = jax.random.uniform(k2, (1, 100), jnp.float32, -1.0, 1.0) / jnp.sqrt(784.0)
    w2 = jax.random.uniform(k3, (100, 100), jnp.float32, -1.0, 1.0) / jnp.sqrt(100.0)
    b2 = jax.random.uniform(k4, (1, 100), jnp.float32, -1.0, 1.0) / jnp.sqrt(100.0)
    w3 = jax.random.uniform(k5, (100, 10), jnp.float32, -1.0, 1.0) / jnp.sqrt(100.0)
    b3 = jax.random.uniform(k6, (1, 10), jnp.float32, -1.0, 1.0) / jnp.sqrt(100.0)
    return (w1, b1, w2, b2, w3, b3)


def reference_forward(x_nchw, params):
    """Pure-JAX reference using the same bf16 operand rounding as the kernel."""
    w1, b1, w2, b2, w3, b3 = params
    bf = lambda a: a.astype(jnp.bfloat16).astype(jnp.float32)
    x = x_nchw.reshape(x_nchw.shape[0], -1)
    h1 = jnp.maximum(bf(x) @ bf(w1) + b1, 0.0)
    h2 = jnp.maximum(bf(h1) @ bf(w2) + b2, 0.0)
    logits = bf(h2) @ bf(w3) + b3
    return jax.nn.log_softmax(logits, axis=1)


if __name__ == "__main__":
    key = jax.random.PRNGKey(0)
    kx, kp = jax.random.split(key)
    params = init_params(kp)

    # MNIST-like input, NCHW as PyTorch expects: batch=8, 1 channel, 28x28.
    x = jax.random.normal(kx, (8, 1, 28, 28), dtype=jnp.float32)

    out = net_forward(x, params)
    out = jax.block_until_ready(out)

    ref = reference_forward(x, params)
    assert out.shape == (8, 10)
    # bf16 output store costs ~3 significant digits on the log-probs; tolerance covers it.
    assert jnp.allclose(out, ref, atol=3e-2, rtol=3e-2), "mismatch vs JAX reference"

    print("KERNEL_OK")
</pallas_src>

<mosaic_0001>
module attributes {stable_mosaic.version = 11 : i64} {
  func.func @mlp_logsoftmax_kernel(%arg0: i32, %arg1: memref<16x784xf32, #tpu.memory_space<vmem>>, %arg2: memref<784x128xbf16, #tpu.memory_space<vmem>>, %arg3: memref<1x128xf32, #tpu.memory_space<vmem>>, %arg4: memref<128x128xbf16, #tpu.memory_space<vmem>>, %arg5: memref<1x128xf32, #tpu.memory_space<vmem>>, %arg6: memref<128x128xbf16, #tpu.memory_space<vmem>>, %arg7: memref<1x128xf32, #tpu.memory_space<vmem>>, %arg8: memref<16x128xbf16, #tpu.memory_space<vmem>>) attributes {dimension_semantics = [#tpu.dimension_semantics<parallel>], iteration_bounds = array<i64: 1>, scalar_prefetch = 0 : i64, scratch_operands = 0 : i64, tpu.core_type = #tpu.core_type<tc>, window_params = [{transform_indices = @transform_0, window_bounds = array<i64: 16, 784>}, {pipeline_mode = #tpu.pipeline_mode<synchronous>, transform_indices = @transform_1, window_bounds = array<i64: 784, 128>}, {pipeline_mode = #tpu.pipeline_mode<synchronous>, transform_indices = @transform_2, window_bounds = array<i64: 1, 128>}, {pipeline_mode = #tpu.pipeline_mode<synchronous>, transform_indices = @transform_3, window_bounds = array<i64: 128, 128>}, {pipeline_mode = #tpu.pipeline_mode<synchronous>, transform_indices = @transform_4, window_bounds = array<i64: 1, 128>}, {pipeline_mode = #tpu.pipeline_mode<synchronous>, transform_indices = @transform_5, window_bounds = array<i64: 128, 128>}, {pipeline_mode = #tpu.pipeline_mode<synchronous>, transform_indices = @transform_6, window_bounds = array<i64: 1, 128>}, {transform_indices = @transform_7, window_bounds = array<i64: 16, 128>}]} {
    %c0 = arith.constant 0 : index
    %c0_0 = arith.constant 0 : index
    %0 = vector.load %arg1[%c0, %c0_0] : memref<16x784xf32, #tpu.memory_space<vmem>>, vector<16x784xf32>
    %1 = arith.truncf %0 : vector<16x784xf32> to vector<16x784xbf16>
    %c0_1 = arith.constant 0 : index
    %c0_2 = arith.constant 0 : index
    %2 = vector.load %arg2[%c0_1, %c0_2] : memref<784x128xbf16, #tpu.memory_space<vmem>>, vector<784x128xbf16>
    %cst = arith.constant dense<0.000000e+00> : vector<16x128xf32>
    %3 = tpu.matmul %1, %2, %cst {dimension_numbers = #tpu.dot_dimension_numbers<[1], [0], [0], [1], [0, 0, 1, 1], [], []>} : vector<16x784xbf16>, vector<784x128xbf16>, vector<16x128xf32> -> vector<16x128xf32>
    %c0_3 = arith.constant 0 : index
    %c0_4 = arith.constant 0 : index
    %4 = vector.load %arg3[%c0_3, %c0_4] : memref<1x128xf32, #tpu.memory_space<vmem>>, vector<1x128xf32>
    %5 = vector.broadcast %4 : vector<1x128xf32> to vector<16x128xf32>
    %6 = arith.addf %3, %5 : vector<16x128xf32>
    %cst_5 = arith.constant 0.000000e+00 : f32
    %7 = vector.broadcast %cst_5 : f32 to vector<16x128xf32>
    %8 = arith.maximumf %6, %7 : vector<16x128xf32>
    %9 = arith.truncf %8 : vector<16x128xf32> to vector<16x128xbf16>
    %c0_6 = arith.constant 0 : index
    %c0_7 = arith.constant 0 : index
    %10 = vector.load %arg4[%c0_6, %c0_7] : memref<128x128xbf16, #tpu.memory_space<vmem>>, vector<128x128xbf16>
    %cst_8 = arith.constant dense<0.000000e+00> : vector<16x128xf32>
    %11 = tpu.matmul %9, %10, %cst_8 {dimension_numbers = #tpu.dot_dimension_numbers<[1], [0], [0], [1], [0, 0, 1, 1], [], []>} : vector<16x128xbf16>, vector<128x128xbf16>, vector<16x128xf32> -> vector<16x128xf32>
    %c0_9 = arith.constant 0 : index
    %c0_10 = arith.constant 0 : index
    %12 = vector.load %arg5[%c0_9, %c0_10] : memref<1x128xf32, #tpu.memory_space<vmem>>, vector<1x128xf32>
    %13 = vector.broadcast %12 : vector<1x128xf32> to vector<16x128xf32>
    %14 = arith.addf %11, %13 : vector<16x128xf32>
    %cst_11 = arith.constant 0.000000e+00 : f32
    %15 = vector.broadcast %cst_11 : f32 to vector<16x128xf32>
    %16 = arith.maximumf %14, %15 : vector<16x128xf32>
    %17 = arith.truncf %16 : vector<16x128xf32> to vector<16x128xbf16>
    %c0_12 = arith.constant 0 : index
    %c0_13 = arith.constant 0 : index
    %18 = vector.load %arg6[%c0_12, %c0_13] : memref<128x128xbf16, #tpu.memory_space<vmem>>, vector<128x128xbf16>
    %cst_14 = arith.constant dense<0.000000e+00> : vector<16x128xf32>
    %19 = tpu.matmul %17, %18, %cst_14 {dimension_numbers = #tpu.dot_dimension_numbers<[1], [0], [0], [1], [0, 0, 1, 1], [], []>} : vector<16x128xbf16>, vector<128x128xbf16>, vector<16x128xf32> -> vector<16x128xf32>
    %c0_15 = arith.constant 0 : index
    %c0_16 = arith.constant 0 : index
    %20 = vector.load %arg7[%c0_15, %c0_16] : memref<1x128xf32, #tpu.memory_space<vmem>>, vector<1x128xf32>
    %21 = vector.broadcast %20 : vector<1x128xf32> to vector<16x128xf32>
    %22 = arith.addf %19, %21 : vector<16x128xf32>
    %23 = tpu.iota {dimensions = array<i32: 1>} : vector<16x128xi32>
    %c10_i32 = arith.constant 10 : i32
    %24 = vector.broadcast %c10_i32 : i32 to vector<16x128xi32>
    %25 = arith.cmpi slt, %23, %24 : vector<16x128xi32>
    %cst_17 = arith.constant -1.000000e+30 : f32
    %26 = vector.broadcast %cst_17 : f32 to vector<16x128xf32>
    %27 = arith.select %25, %22, %26 : vector<16x128xi1>, vector<16x128xf32>
    %cst_18 = arith.constant dense<0xFF800000> : vector<16xf32>
    %28 = vector.multi_reduction <maximumf>, %27, %cst_18 [1] : vector<16x128xf32> to vector<16xf32>
    %29 = vector.shape_cast %28 : vector<16xf32> to vector<16x1xf32>
    %30 = vector.broadcast %29 : vector<16x1xf32> to vector<16x128xf32>
    %31 = arith.subf %27, %30 : vector<16x128xf32>
    %32 = math.exp %31 : vector<16x128xf32>
    %cst_19 = arith.constant dense<0.000000e+00> : vector<16xf32>
    %33 = vector.multi_reduction <add>, %32, %cst_19 [1] : vector<16x128xf32> to vector<16xf32>
    %34 = vector.shape_cast %33 : vector<16xf32> to vector<16x1xf32>
    %35 = math.log %34 : vector<16x1xf32>
    %36 = vector.broadcast %35 : vector<16x1xf32> to vector<16x128xf32>
    %37 = arith.subf %31, %36 : vector<16x128xf32>
    %38 = arith.truncf %37 : vector<16x128xf32> to vector<16x128xbf16>
    %c0_20 = arith.constant 0 : index
    %c0_21 = arith.constant 0 : index
    %39 = vector.load %arg8[%c0_20, %c0_21] : memref<16x128xbf16, #tpu.memory_space<vmem>>, vector<16x128xbf16>
    tpu.vector_store %arg8[%c0_20, %c0_21], %38 {strides = array<i32>} : memref<16x128xbf16, #tpu.memory_space<vmem>>, vector<16x128xbf16>,
    return
  }
  func.func @transform_0(%arg0: i32) -> (i32, i32) {
    %c0_i32 = arith.constant 0 : i32
    %c0_i32_0 = arith.constant 0 : i32
    return %arg0, %c0_i32 : i32, i32
  }
  func.func @transform_1(%arg0: i32) -> (i32, i32) {
    %c0_i32 = arith.constant 0 : i32
    %c0_i32_0 = arith.constant 0 : i32
    %c0_i32_1 = arith.constant 0 : i32
    return %c0_i32, %c0_i32_0 : i32, i32
  }
  func.func @transform_2(%arg0: i32) -> (i32, i32) {
    %c0_i32 = arith.constant 0 : i32
    %c0_i32_0 = arith.constant 0 : i32
    %c0_i32_1 = arith.constant 0 : i32
    return %c0_i32, %c0_i32_0 : i32, i32
  }
  func.func @transform_3(%arg0: i32) -> (i32, i32) {
    %c0_i32 = arith.constant 0 : i32
    %c0_i32_0 = arith.constant 0 : i32
    %c0_i32_1 = arith.constant 0 : i32
    return %c0_i32, %c0_i32_0 : i32, i32
  }
  func.func @transform_4(%arg0: i32) -> (i32, i32) {
    %c0_i32 = arith.constant 0 : i32
    %c0_i32_0 = arith.constant 0 : i32
    %c0_i32_1 = arith.constant 0 : i32
    return %c0_i32, %c0_i32_0 : i32, i32
  }
  func.func @transform_5(%arg0: i32) -> (i32, i32) {
    %c0_i32 = arith.constant 0 : i32
    %c0_i32_0 = arith.constant 0 : i32
    %c0_i32_1 = arith.constant 0 : i32
    return %c0_i32, %c0_i32_0 : i32, i32
  }
  func.func @transform_6(%arg0: i32) -> (i32, i32) {
    %c0_i32 = arith.constant 0 : i32
    %c0_i32_0 = arith.constant 0 : i32
    %c0_i32_1 = arith.constant 0 : i32
    return %c0_i32, %c0_i32_0 : i32, i32
  }
  func.func @transform_7(%arg0: i32) -> (i32, i32) {
    %c0_i32 = arith.constant 0 : i32
    %c0_i32_0 = arith.constant 0 : i32
    return %arg0, %c0_i32 : i32, i32
  }
}

</mosaic_0001>

<bundles_post_ra>
// kernel: net_forward.1
= control target key start
LH: loop header
LB: loop body
LE: loop exit
PB: predicated region body
PF: predicated region fallthrough
CT: control target
= control target key end

     0   :  { %v1169_v43 = vmov 0.0   ;;  %vm1170_vm0 = vmmov 0   ;;  %vm447_vm1 = vcmask 130048   ;;  %s1483_s1 = inlined_call_operand.vmem [shape: bf16[784,128], index: 1, kind: input, shape index: {}]   ;;  %s1484_s0 = inlined_call_operand.vmem [shape: f32[16,784], index: 0, kind: input, shape index: {}]   ;;  %s1485_s3 = inlined_call_operand.vmem [shape: bf16[128,128], index: 3, kind: input, shape index: {}]   ;;  %s1486_s5 = inlined_call_operand.vmem [shape: bf16[128,128], index: 5, kind: input, shape index: {}]   ;;  %s1487_s2 = inlined_call_operand.vmem [shape: f32[1,128], index: 2, kind: input, shape index: {}]   ;;  %s1488_s4 = inlined_call_operand.vmem [shape: f32[1,128], index: 4, kind: input, shape index: {}]   ;;  %s1489_s6 = inlined_call_operand.vmem [shape: f32[1,128], index: 6, kind: input, shape index: {}]   ;;  %s1490_s7 = inlined_call_operand.vmem [shape: bf16[16,128], index: 7, kind: output, shape index: {}]  }
   0x1   :  { %v1096_v0 = vld [vmem:[%s1483_s1 + $0x78] sm:$0xff]   ;;  %v1100_v4 = vld [vmem:[%s1483_s1 + $0x70] sm:$0xff]   ;;  %v1104_v8 = vld [vmem:[%s1483_s1 + $0x68] sm:$0xff]  }
   0x2   :  { %v1097_v1 = vld [vmem:[%s1483_s1 + $0x38] sm:$0xff]   ;;  %962 = vmatprep.subr.bf16.mxu0 %v1096_v0  ;;  %v1101_v5 = vld [vmem:[%s1483_s1 + $0x30] sm:$0xff]   ;;  %v1105_v9 = vld [vmem:[%s1483_s1 + $0x28] sm:$0xff]  }
   0x3   :  { %v1098_v2 = vld [vmem:[%s1483_s1 + $0xf8] sm:$0xff]   ;;  %963 = vmatpush3.bf16.msra.mxu0 %v1097_v1  ;;  %v1102_v6 = vld [vmem:[%s1483_s1 + $0xf0] sm:$0xff]   ;;  %v1106_v10 = vld [vmem:[%s1483_s1 + $0xe8] sm:$0xff]  }
   0x4   :  { %v1099_v3 = vld [vmem:[%s1483_s1 + $0xb8] sm:$0xff]   ;;  %984 = vmatprep.subr.bf16.mxu1 %v1098_v2  ;;  %964 = vmatprep.subr.bf16.mxu0 %v1100_v4  ;;  %v1103_v7 = vld [vmem:[%s1483_s1 + $0xb0] sm:$0xff]   ;;  %v1107_v11 = vld [vmem:[%s1483_s1 + $0xa8] sm:$0xff]  }
   0x5   :  { %985 = vmatpush3.bf16.msra.mxu1 %v1099_v3  ;;  %v1108_v12 = vld [vmem:[%s1483_s1 + $0x60] sm:$0xff]   ;;  %v1112_v16 = vld [vmem:[%s1483_s1 + $0x58] sm:$0xff]   ;;  %v1116_v20 = vld [vmem:[%s1483_s1 + $0x50] sm:$0xff]  }
   0x6   :  { %986 = vmatprep.subr.bf16.mxu1 %v1102_v6  ;;  %v1109_v13 = vld [vmem:[%s1483_s1 + $0x20] sm:$0xff]   ;;  %v1113_v17 = vld [vmem:[%s1483_s1 + $0x18] sm:$0xff]   ;;  %v1117_v21 = vld [vmem:[%s1483_s1 + $0x10] sm:$0xff]  }
   0x7   :  { %965 = vmatpush3.bf16.msra.mxu0 %v1101_v5  ;;  %v1110_v14 = vld [vmem:[%s1483_s1 + $0xe0] sm:$0xff]   ;;  %v1114_v18 = vld [vmem:[%s1483_s1 + $0xd8] sm:$0xff]   ;;  %v1118_v22 = vld [vmem:[%s1483_s1 + $0xd0] sm:$0xff]  }
   0x8   :  { %966 = vmatprep.subr.bf16.mxu0 %v1104_v8  ;;  %v1111_v15 = vld [vmem:[%s1483_s1 + $0xa0] sm:$0xff]   ;;  %v1115_v19 = vld [vmem:[%s1483_s1 + $0x98] sm:$0xff]   ;;  %v1119_v23 = vld [vmem:[%s1483_s1 + $0x90] sm:$0xff]  }
   0x9   :  { %987 = vmatpush3.bf16.msra.mxu1 %v1103_v7  ;;  %v1120_v24 = vld [vmem:[%s1483_s1 + $0x48] sm:$0xff]   ;;  %v1124_v28 = vld [vmem:[%s1483_s1 + $0x40] sm:$0xff]   ;;  %v34_v36 = vld [vmem:[%s1484_s0 + $0x38] sm:$0xff] }
   0xa   :  { %988 = vmatprep.subr.bf16.mxu1 %v1106_v10  ;;  %v1121_v25 = vld [vmem:[%s1483_s1 + $0x8] sm:$0xff]   ;;  %v1125_v29 = vld [vmem:[%s1483_s1] sm:$0xff]   ;;  %v1128_v38 = vld [vmem:[%s1483_s1 + $0x178] sm:$0xff]  }
   0xb   :  { %967 = vmatpush3.bf16.msra.mxu0 %v1105_v9  ;;  %v1122_v26 = vld [vmem:[%s1483_s1 + $0xc8] sm:$0xff]   ;;  %v1126_v30 = vld [vmem:[%s1483_s1 + $0xc0] sm:$0xff]   ;;  %v30_v39 = vld [vmem:[%s1484_s0 + $0x18] sm:$0xff] }
   0xc   :  { %968 = vmatprep.subr.bf16.mxu0 %v1108_v12  ;;  %v1123_v27 = vld [vmem:[%s1483_s1 + $0x88] sm:$0xff]   ;;  %v35_v32 = vld [vmem:[%s1484_s0 + $0x40] sm:$0xff]  ;;  %v37_v40 = vld [vmem:[%s1484_s0 + $0x50] sm:$0xff] }
   0xd   :  { %989 = vmatpush3.bf16.msra.mxu1 %v1107_v11  ;;  %v28_v31 = vld [vmem:[%s1484_s0 + $0x8] sm:$0xff]  ;;  %v1127_v34 = vld [vmem:[%s1483_s1 + $0x80] sm:$0xff]   ;;  %v44_v41 = vpack.c.bf16 %v37_v40, %v30_v39  ;;  %v1129_v42 = vld [vmem:[%s1483_s1 + $0x138] sm:$0xff]  }
   0xe   :  { %990 = vmatprep.subr.bf16.mxu1 %v1110_v14  ;;  %v42_v33 = vpack.c.bf16 %v35_v32, %v28_v31  ;;  %v27_v35 = vld [vmem:[%s1484_s0] sm:$0xff]  ;;  %v29_v44 = vld [vmem:[%s1484_s0 + $0x10] sm:$0xff]  ;;  %v36_v45 = vld [vmem:[%s1484_s0 + $0x48] sm:$0xff] }
   0xf   :  { %969 = vmatpush3.bf16.msra.mxu0 %v1109_v13  ;;  %v41_v37 = vpack.c.bf16 %v34_v36, %v27_v35  ;;  %524 = vmatprep.mubr.bf16.mxu1 %v44_v41  ;;  %v43_v46 = vpack.c.bf16 %v36_v45, %v29_v44  ;;  %v1130_v47 = vld [vmem:[%s1483_s1 + $0x170] sm:$0xff]   ;;  %v1132_v49 = vld [vmem:[%s1483_s1 + $0x168] sm:$0xff]   ;;  %v1134_v51 = vld [vmem:[%s1483_s1 + $0x160] sm:$0xff]  }
  0x10   :  { %970 = vmatprep.subr.bf16.mxu0 %v1112_v16  ;;  %483 = vmatprep.mubr.bf16.mxu0 %v42_v33  ;;  %v1131_v48 = vld [vmem:[%s1483_s1 + $0x130] sm:$0xff]   ;;  %v1133_v50 = vld [vmem:[%s1483_s1 + $0x128] sm:$0xff]   ;;  %v1135_v52 = vld [vmem:[%s1483_s1 + $0x120] sm:$0xff]  }
  0x11   :  { %991 = vmatpush3.bf16.msra.mxu1 %v1111_v15  ;;  %v1136_v53 = vld [vmem:[%s1483_s1 + $0x158] sm:$0xff]   ;;  %v1138_v55 = vld [vmem:[%s1483_s1 + $0x150] sm:$0xff]   ;;  %v1144_v56 = vld [vmem:[%s1483_s1 + $0x180] sm:$0xff]  }
  0x12   :  { %992 = vmatprep.subr.bf16.mxu1 %v1114_v18  ;;  %v1137_v54 = vld [vmem:[%s1483_s1 + $0x118] sm:$0xff]   ;;  %v32_v57 = vld [vmem:[%s1484_s0 + $0x28] sm:$0xff]  ;;  %v39_v58 = vld [vmem:[%s1484_s0 + $0x60] sm:$0xff] }
  0x13   :  { %971 = vmatpush3.bf16.msra.mxu0 %v1113_v17  ;;  %v1139_v59 = vld [vmem:[%s1483_s1 + $0x110] sm:$0xff]   ;;  %v46_v60 = vpack.c.bf16 %v39_v58, %v32_v57  ;;  %v40_v62 = vld [vmem:[%s1484_s0 + $0x68] sm:$0xff]  ;;  %v1142_v2 = vld [vmem:[%s1483_s1 + $0x140] sm:$0xff]  }
  0x14   :  { %972 = vmatprep.subr.bf16.mxu0 %v1116_v20  ;;  %v33_v61 = vld [vmem:[%s1484_s0 + $0x30] sm:$0xff]  ;;  %v1140_v63 = vld [vmem:[%s1483_s1 + $0x148] sm:$0xff]   ;;  %v1143_v3 = vld [vmem:[%s1483_s1 + $0x100] sm:$0xff]  }
  0x15   :  { %993 = vmatpush3.bf16.msra.mxu1 %v1115_v19  ;;  %v47_v0 = vpack.c.bf16 %v40_v62, %v33_v61  ;;  %v1141_v1 = vld [vmem:[%s1483_s1 + $0x108] sm:$0xff]   ;;  %v31_v4 = vld [vmem:[%s1484_s0 + $0x20] sm:$0xff]  ;;  %v38_v5 = vld [vmem:[%s1484_s0 + $0x58] sm:$0xff] }
  0x16   :  { %994 = vmatprep.subr.bf16.mxu1 %v1118_v22  ;;  %v45_v6 = vpack.c.bf16 %v38_v5, %v31_v4  ;;  %v1145_v7 = vld [vmem:[%s1485_s3 + $0x38] sm:$0xff]   ;;  %v1146_v8 = vld [vmem:[%s1485_s3 + $0x30] sm:$0xff]   ;;  %v1147_v9 = vld [vmem:[%s1485_s3 + $0x28] sm:$0xff]  }
  0x17   :  { %973 = vmatpush3.bf16.msra.mxu0 %v1117_v21  ;;  %v1148_v10 = vld [vmem:[%s1485_s3 + $0x20] sm:$0xff]   ;;  %v1149_v11 = vld [vmem:[%s1485_s3 + $0x18] sm:$0xff]   ;;  %v1150_v12 = vld [vmem:[%s1485_s3 + $0x10] sm:$0xff]  }
  0x18   :  { %974 = vmatprep.subr.bf16.mxu0 %v1120_v24  ;;  %v1151_v13 = vld [vmem:[%s1485_s3 + $0x8] sm:$0xff]   ;;  %v1152_v14 = vld [vmem:[%s1485_s3] sm:$0xff]   ;;  %v1153_v15 = vld [vmem:[%s1486_s5 + $0x38] sm:$0xff]  }
  0x19   :  { %995 = vmatpush3.bf16.msra.mxu1 %v1119_v23  ;;  %v1154_v16 = vld [vmem:[%s1486_s5 + $0x30] sm:$0xff]   ;;  %v1155_v17 = vld [vmem:[%s1486_s5 + $0x28] sm:$0xff]   ;;  %v1156_v18 = vld [vmem:[%s1486_s5 + $0x20] sm:$0xff]  }
  0x1a   :  { %996 = vmatprep.subr.bf16.mxu1 %v1122_v26  ;;  %v1157_v19 = vld [vmem:[%s1486_s5 + $0x18] sm:$0xff]   ;;  %v884_v32 = vld [vmem:[%s1487_s2] ss:$0 sm:$0xff] }
  0x1b   :  { %975 = vmatpush3.bf16.msra.mxu0 %v1121_v25  ;;  %v1160_v57 = vld [vmem:[%s1486_s5] sm:$0xff]  }
  0x1c   :  { %976 = vmatprep.subr.bf16.mxu0 %v1124_v28  ;;  %v935_v58 = vld [vmem:[%s1488_s4] ss:$0 sm:$0xff] }
  0x1d   :  { %997 = vmatpush3.bf16.msra.mxu1 %v1123_v27  ;;  %v944_v5 = vld [vmem:[%s1489_s6] ss:$0 sm:$0xff] }
  0x1e   :  { %998 = vmatprep.subr.bf16.mxu1 %v1126_v30 }
  0x1f   :  { %977 = vmatpush3.bf16.msra.mxu0 %v1125_v29 }
  0x20   :  { %1006 = vmatprep.subr.bf16.mxu0 %v1128_v38 }
  0x21   :  { %999 = vmatpush3.bf16.msra.mxu1 %v1127_v34 }
  0x22   :  { %1048 = vmatprep.subr.bf16.mxu1 %v1169_v43  ;;  %484 = vmatmul.mubr.bf16.vlgmr.msra.gmra.mxu0 %v41_v37 }
  0x23   :  { %1007 = vmatpush3.bf16.msra.mxu0 %v1129_v42  ;;  %565 = vmatprep.mubr.bf16.mxu0 %v46_v60 }
  0x24   :  { %525 = vmatmul.mubr.bf16.vlgmr.msra.gmra.mxu1 %v43_v46  ;;  %1008 = vmatprep.subr.bf16.mxu0 %v1130_v47 }
  0x25   :  { %1050 = vmatprep.mubr.msk.bf16.mxu1 %vm1170_vm0, %v1169_v43  ;;  %1049 = vmatpush3.bf16.msra.mxu1 %v1144_v56  ;;  %v1159_v56 = vld [vmem:[%s1486_s5 + $0x8] sm:$0xff]  }
  0x26   :  { %1054 = vmatprep.subr.bf16.mxu1 %v1169_v43 }
  0x27   :  { %1009 = vmatpush3.bf16.msra.mxu0 %v1131_v48 }
  0x28   :  { %1010 = vmatprep.subr.bf16.mxu0 %v1132_v49 }
  0x2b   :  { %1011 = vmatpush3.bf16.msra.mxu0 %v1133_v50 }
  0x2c   :  { %1012 = vmatprep.subr.bf16.mxu0 %v1134_v51  ;;  %1051 = vmatmul.mubr.msk.bf16.vlgmr.msra.gmra.mxu1 %vm447_vm1, %v47_v0 }
  0x2d   :  { %1070 = vmatprep.mubr.msk.bf16.mxu1 %vm1170_vm0, %v1169_v43  ;;  %1055 = vmatpush3.bf16.msra.mxu1 %v1145_v7 }
  0x2e   :  { %1056 = vmatprep.subr.bf16.mxu1 %v1169_v43 }
  0x2f   :  { %1013 = vmatpush3.bf16.msra.mxu0 %v1135_v52 }
  0x30   :  { %1014 = vmatprep.subr.bf16.mxu0 %v1136_v53 }
  0x31   :  { %1057 = vmatpush3.bf16.msra.mxu1 %v1146_v8 }
  0x32   :  { %1058 = vmatprep.subr.bf16.mxu1 %v1169_v43 }
  0x33   :  { %1015 = vmatpush3.bf16.msra.mxu0 %v1137_v54 }
  0x34   :  { %1016 = vmatprep.subr.bf16.mxu0 %v1138_v55  ;;  %v1158_v55 = vld [vmem:[%s1486_s5 + $0x10] sm:$0xff]  }
  0x35   :  { %1059 = vmatpush3.bf16.msra.mxu1 %v1147_v9 }
  0x36   :  { %1060 = vmatprep.subr.bf16.mxu1 %v1169_v43 }
  0x37   :  { %1017 = vmatpush3.bf16.msra.mxu0 %v1139_v59 }
  0x38   :  { %1018 = vmatprep.subr.bf16.mxu0 %v1140_v63 }
  0x39   :  { %1061 = vmatpush3.bf16.msra.mxu1 %v1148_v10 }
  0x3a   :  { %1062 = vmatprep.subr.bf16.mxu1 %v1169_v43 }
  0x3b   :  { %1019 = vmatpush3.bf16.msra.mxu0 %v1141_v1 }
  0x3c   :  { %1020 = vmatprep.subr.bf16.mxu0 %v1142_v2 }
  0x3d   :  { %1063 = vmatpush3.bf16.msra.mxu1 %v1149_v11 }
  0x3e   :  { %1064 = vmatprep.subr.bf16.mxu1 %v1169_v43 }
  0x3f   :  { %1021 = vmatpush3.bf16.msra.mxu0 %v1143_v3 }
  0x40   :  { %1074 = vmatprep.subr.bf16.mxu0 %v1169_v43 }
  0x41   :  { %1065 = vmatpush3.bf16.msra.mxu1 %v1150_v12 }
  0x42   :  { %566 = vmatmul.mubr.bf16.vlgmr.msra.gmra.mxu0 %v45_v6  ;;  %1066 = vmatprep.subr.bf16.mxu1 %v1169_v43 }
  0x43   :  { %1090 = vmatprep.mubr.msk.bf16.mxu0 %vm1170_vm0, %v1169_v43  ;;  %1075 = vmatpush3.bf16.msra.mxu0 %v1153_v15 }
  0x44   :  { %1076 = vmatprep.subr.bf16.mxu0 %v1169_v43 }
  0x45   :  { %1067 = vmatpush3.bf16.msra.mxu1 %v1151_v13 }
  0x46   :  { %1068 = vmatprep.subr.bf16.mxu1 %v1169_v43 }
  0x47   :  { %1077 = vmatpush3.bf16.msra.mxu0 %v1154_v16 }
  0x48   :  { %1078 = vmatprep.subr.bf16.mxu0 %v1169_v43 }
  0x49   :  { %1069 = vmatpush3.bf16.msra.mxu1 %v1152_v14 }
  0x4b   :  { %1079 = vmatpush3.bf16.msra.mxu0 %v1155_v17 }
  0x4c   :  { %1080 = vmatprep.subr.bf16.mxu0 %v1169_v43 }
  0x4f   :  { %1081 = vmatpush3.bf16.msra.mxu0 %v1156_v18 }
  0x50   :  { %1082 = vmatprep.subr.bf16.mxu0 %v1169_v43 }
  0x53   :  { %1083 = vmatpush3.bf16.msra.mxu0 %v1157_v19 }
  0x54   :  { %1084 = vmatprep.subr.bf16.mxu0 %v1169_v43 }
  0x57   :  { %1085 = vmatpush3.bf16.msra.mxu0 %v1158_v55 }
  0x58   :  { %1086 = vmatprep.subr.bf16.mxu0 %v1169_v43 }
  0x5b   :  { %1087 = vmatpush3.bf16.msra.mxu0 %v1159_v56 }
  0x5c   :  { %1088 = vmatprep.subr.bf16.mxu0 %v1169_v43  ;;  %v845_v43 = vlaneseq }
  0x5e   :  { %v846_v4 = vand.u32 127, %v845_v43 }
  0x5f   :  { %1089 = vmatpush3.bf16.msra.mxu0 %v1160_v57 }
  0x60   :  { %vm847_vm2 = vcmp.lt.s32.totalorder %v846_v4, 10 }
  0xe2   :  { %v978_v23 = vpop.f32.mrf.mxu0 }
  0xe4   :  { %v1000_v20 = vpop.f32.mrf.mxu1  ;;  %v979_v25 = vpop.f32.mrf.mxu0 }
  0xe5   :  { %v980_v31 = vadd.f32 %v979_v25, %v978_v23 }
  0xe6   :  { %v1001_v21 = vpop.f32.mrf.mxu1  ;;  %v981_v28 = vpop.f32.mrf.mxu0 }
  0xe7   :  { %v486_v34 = vadd.f32 %v980_v31, %v884_v32  ;;  %v1002_v35 = vadd.f32 %v1001_v21, %v1000_v20 }
  0xe8   :  { %v1003_v22 = vpop.f32.mrf.mxu1  ;;  %v982_v33 = vpop.f32.mrf.mxu0 }
  0xe9   :  { %v983_v36 = vadd.f32 %v982_v33, %v981_v28  ;;  %v527_v39 = vadd.f32 %v1002_v35, %v486_v34 }
  0xea   :  { %v1004_v24 = vpop.f32.mrf.mxu1 }
  0xeb   :  { %v489_v40 = vadd.f32 %v983_v36, %v884_v32  ;;  %v1005_v41 = vadd.f32 %v1004_v24, %v1003_v22 }
  0xec   :  { %v608_v26 = vpop.f32.mrf.mxu1 }
  0xed   :  { %v530_v47 = vadd.f32 %v1005_v41, %v489_v40 }
  0xee   :  { %v1052_v27 = vpop.f32.mrf.mxu1 }
  0xf0   :  { %v611_v29 = vpop.f32.mrf.mxu1 }
  0xf2   :  { %v1053_v30 = vpop.f32.mrf.mxu1 }
 0x102   :  { %v1022_v37 = vpop.f32.mrf.mxu0 }
 0x104   :  { %v1023_v38 = vpop.f32.mrf.mxu0 }
 0x105   :  { %v1024_v42 = vadd.f32 %v1023_v38, %v1022_v37 }
 0x106   :  { %v1025_v44 = vpop.f32.mrf.mxu0 }
 0x107   :  { %v568_v45 = vadd.f32 %v1024_v42, %v527_v39 }
 0x108   :  { %v1026_v46 = vpop.f32.mrf.mxu0 }
 0x109   :  { %v1027_v48 = vadd.f32 %v1026_v46, %v1025_v44  ;;  %v609_v49 = vadd.f32 %v608_v26, %v568_v45 }
 0x10b   :  { %v571_v50 = vadd.f32 %v1027_v48, %v530_v47  ;;  %v615_v52 = vmax.f32 %v609_v49, 0.0 }
 0x10d   :  { %v612_v51 = vadd.f32 %v611_v29, %v571_v50 }
 0x10f   :  { %v616_v53 = vmax.f32 %v612_v51, 0.0 }
 0x111   :  { %v617_v54 = vpack.c.bf16 %v616_v53, %v615_v52 }
 0x113   :  { %1071 = vmatmul.mubr.bf16.vlgmr.msra.gmra.mxu1 %v617_v54 }
 0x1d3   :  { %v723_v59 = vpop.f32.mrf.mxu1 }
 0x1d4   :  { %v724_v61 = vadd.f32 %v935_v58, %v723_v59 }
 0x1d5   :  { %v1072_v60 = vpop.f32.mrf.mxu1 }
 0x1d6   :  { %v730_v1 = vmax.f32 %v724_v61, 0.0 }
 0x1d7   :  { %v726_v62 = vpop.f32.mrf.mxu1 }
 0x1d8   :  { %v727_v63 = vadd.f32 %v935_v58, %v726_v62 }
 0x1d9   :  { %v1073_v0 = vpop.f32.mrf.mxu1 }
 0x1da   :  { %v731_v2 = vmax.f32 %v727_v63, 0.0 }
 0x1dc   :  { %v732_v3 = vpack.c.bf16 %v731_v2, %v730_v1 }
 0x1de   :  { %1091 = vmatmul.mubr.bf16.vlgmr.msra.gmra.mxu0 %v732_v3 }
 0x29e   :  { %v838_v6 = vpop.f32.mrf.mxu0 }
 0x29f   :  { %v839_v7 = vadd.f32 %v944_v5, %v838_v6 }
 0x2a0   :  { %v1092_v8 = vpop.f32.mrf.mxu0 }
 0x2a1   :  { %v848_v9 = vsel %vm847_vm2, %v839_v7, -1e+30 }
 0x2a2   :  { %850 = vmax.xlane.f32.xlu0 %v848_v9  ;;  %v841_v10 = vpop.f32.mrf.mxu0 }
 0x2a3   :  { %v842_v11 = vadd.f32 %v944_v5, %v841_v10 }
 0x2a4   :  { %v1093_v12 = vpop.f32.mrf.mxu0 }
 0x2a5   :  { %v849_v13 = vsel %vm847_vm2, %v842_v11, -1e+30 }
 0x2a6   :  { %852 = vmax.xlane.f32.xlu0 %v849_v13 }
 0x32b   :  { %v851_v14 = vpop.xlane.xlu0 %850 }
 0x32c   :  { %v854_v15 = vsub.f32 %v848_v9, %v851_v14 }
 0x32e   :  { %v856_v16 = vmul.f32 1.442695, %v854_v15 }
 0x32f   :  { %v853_v17 = vpop.xlane.xlu0 %852 }
 0x330   :  { %v855_v18 = vsub.f32 %v849_v13, %v853_v17  ;;  %1161 = vpow2.f32 %v856_v16 }
 0x332   :  { %v858_v19 = vmul.f32 1.442695, %v855_v18 }
 0x334   :  { %1163 = vpow2.f32 %v858_v19 }
 0x33d   :  { %v1162_v20 = vpop.eup %1161 }
 0x33e   :  { %860 = vadd.xlane.f32.xlu1 %v1162_v20 }
 0x341   :  { %v1164_v21 = vpop.eup %1163 }
 0x342   :  { %862 = vadd.xlane.f32.xlu1 %v1164_v21 }
 0x3c7   :  { %v861_v22 = vpop.xlane.xlu1 %860 }
 0x3c8   :  { %1165 = vlog2.f32 %v861_v22 }
 0x3cb   :  { %v863_v23 = vpop.xlane.xlu1 %862 }
 0x3cc   :  { %1167 = vlog2.f32 %v863_v23 }
 0x3d5   :  { %v1166_v24 = vpop.eup %1165 }
 0x3d6   :  { %v865_v25 = vmul.f32 0.6931472, %v1166_v24 }
 0x3d8   :  { %v868_v28 = vsub.f32 %v854_v15, %v865_v25 }
 0x3d9   :  { %v1168_v26 = vpop.eup %1167 }
 0x3da   :  { %v867_v27 = vmul.f32 0.6931472, %v1168_v26 }
 0x3dc   :  { %v869_v29 = vsub.f32 %v855_v18, %v867_v27 }
 0x3de   :  { %v960_v30 = vpack.c.bf16 %v869_v29, %v868_v28 }
 0x3e0   :  { %961 = vst [vmem:[%s1490_s7] sm:$0xff] %v960_v30  }

</bundles_post_ra>
